<compile_context>
chip_gen: v5e
topology: v5e:2x2
jax: 0.10.0
libtpu: 0.0.40
codegen_flags: <defaults>
</compile_context>

<pallas_src>
import functools

import jax
import jax.numpy as jnp
import numpy as np
from jax import lax
from jax.experimental import pallas as pl
from jax.experimental.pallas import tpu as pltpu


def _round_up(a, m):
    return (a + m - 1) // m * m


# Cody-Waite split of pi/2 (cephes f32 constants, doubled) + cephes minimax polys.
_TWO_OVER_PI = 0.63661977236758134308
_PIO2_HI = 1.5703125                      # exact in f32 (few mantissa bits)
_PIO2_MD = 4.837512969970703125e-4        # exact in f32
_PIO2_LO = 7.549789954891882e-8


def _sincos(x):
    """Fused sin/cos in f32: one shared range reduction, two minimax polys."""
    kf = jnp.floor(x * _TWO_OVER_PI + 0.5)           # nearest multiple of pi/2
    r = x - kf * _PIO2_HI
    r = r - kf * _PIO2_MD
    r = r - kf * _PIO2_LO                            # |r| <= pi/4 (+eps)
    r2 = r * r
    s = r + r * r2 * (-1.6666654611e-1
                      + r2 * (8.3321608736e-3
                              + r2 * (-1.9515295891e-4)))
    c = 1.0 + r2 * (-0.5
                    + r2 * (4.166664568298827e-2
                            + r2 * (-1.388731625493765e-3
                                    + r2 * 2.443315711809948e-5)))
    q = kf.astype(jnp.int32) & 3                     # quadrant (correct for kf < 0)
    sin_x = jnp.where(q == 0, s, jnp.where(q == 1, c, jnp.where(q == 2, -s, -c)))
    cos_x = jnp.where(q == 0, c, jnp.where(q == 1, -s, jnp.where(q == 2, -c, s)))
    return sin_x, cos_x


def _time_embedding_kernel(x_ref, w_ref, out_ref, *, chunk, n_chunks):
    # x_ref: (tb, 1), w_ref: (1, H), out_ref: (tb, 2*H)
    H = w_ref.shape[1]
    w = w_ref[...].astype(jnp.float32)               # (1, H); 2*pi already folded in

    def body(ci, carry):
        row0 = pl.multiple_of(ci * chunk, chunk)
        xa = x_ref[pl.ds(row0, chunk), :].astype(jnp.float32)   # (chunk, 1)
        s, c = _sincos(xa * w)                                  # (chunk, H), f32 math
        out_ref[pl.ds(row0, chunk), :H] = s.astype(out_ref.dtype)
        out_ref[pl.ds(row0, chunk), H:] = c.astype(out_ref.dtype)
        return carry

    # Unrolled chunked loop: bounds the live range per chunk (no whole-tile
    # proj/sin/cos spilling the 64-vreg file) while keeping stores lane-dense.
    lax.fori_loop(0, n_chunks, body, 0, unroll=True)


def time_embedding(x, w_2pi, *, out_dtype=None, block_b=512):
    """Gaussian Fourier time embedding.

    x:      (B,) timesteps (any dtype; math is done in f32).
    w_2pi:  (H,) frozen random projection, ALREADY scaled by 2*pi at init.
    Returns (B, 2*H) = [sin(x * w_2pi), cos(x * w_2pi)]  (== PyTorch forward).
    """
    B = x.shape[0]
    H = w_2pi.shape[0]
    E = 2 * H
    if out_dtype is None:
        # Never derive the output dtype from x (timesteps may be int32/int64).
        out_dtype = w_2pi.dtype if jnp.issubdtype(w_2pi.dtype, jnp.floating) else jnp.float32

    # Rows per in-kernel chunk: keep chunk*H around 8K f32 elements so the
    # fused-sincos working set stays inside the vector register file.
    chunk = max(8, min(64, (8192 // max(H, 1)) // 8 * 8))
    # Shrink for small B so we still get >=2 grid steps (keeps v7x's 2nd TC busy).
    chunk = min(chunk, max(8, _round_up(pl.cdiv(B, 2), 8)))

    # Batch tile: multiple of `chunk`, aims for >=2 grid steps, capped so the
    # double-buffered (tb, E) output blocks stay far below v7x's 32 MiB default
    # scoped VMEM (on v5e/v6e block_b may be raised to 1024 for fewer steps).
    tb = min(block_b, _round_up(max(pl.cdiv(B, 2), 1), chunk))
    tb = max(chunk, tb // chunk * chunk)
    n_chunks = tb // chunk

    x2d = x.reshape(B, 1)
    w2d = w_2pi.reshape(1, H)

    kernel = functools.partial(_time_embedding_kernel, chunk=chunk, n_chunks=n_chunks)
    out_itemsize = jnp.dtype(out_dtype).itemsize

    # No wrapper-side pad / slice: Pallas handles the ragged last batch block.
    return pl.pallas_call(
        kernel,
        out_shape=jax.ShapeDtypeStruct((B, E), out_dtype),
        grid_spec=pl.GridSpec(
            grid=(pl.cdiv(B, tb),),
            in_specs=[
                pl.BlockSpec((tb, 1), lambda i: (i, 0)),   # timestep column
                pl.BlockSpec((1, H), lambda i: (0, 0)),    # frozen projection, resident
            ],
            out_specs=pl.BlockSpec((tb, E), lambda i: (i, 0)),
        ),
        compiler_params=pltpu.CompilerParams(
            dimension_semantics=("parallel",),  # shards batch across v7x's 2 TCs
        ),
        cost_estimate=pl.CostEstimate(
            flops=40 * B * H,          # fused range reduction + 2 polys (VALU)
            transcendentals=0,
            bytes_accessed=(x2d.size * x2d.dtype.itemsize
                            + w2d.size * w2d.dtype.itemsize
                            + B * E * out_itemsize),
        ),
    )(x2d, w2d)


if __name__ == "__main__":
    embed_dim = 256   # each sin/cos half is 128 lanes -> lane-dense stores
    scale = 30.0
    B = 16            # batch of timesteps

    key = jax.random.PRNGKey(0)
    k_w, k_x = jax.random.split(key)

    # Frozen parameter (requires_grad=False): W = randn(embed_dim // 2) * scale.
    W = jax.random.normal(k_w, (embed_dim // 2,), dtype=jnp.float32) * scale
    # One-time fold of the constant 2*pi into the frozen buffer (init-time).
    W_2pi = W * jnp.float32(2.0 * np.pi)

    # Example input: timesteps in [0, 1).
    x = jax.random.uniform(k_x, (B,), dtype=jnp.float32)

    out = jax.block_until_ready(time_embedding(x, W_2pi))

    # Reference check (pure JAX), same folded-parameter argument rounding.
    x_proj = x[:, None] * W_2pi[None, :]
    ref = jnp.concatenate([jnp.sin(x_proj), jnp.cos(x_proj)], axis=-1)
    np.testing.assert_allclose(np.asarray(out), np.asarray(ref), rtol=1e-5, atol=5e-5)

    # Looser check against the literal PyTorch expression (associativity of the
    # 2*pi multiply differs in the last bits of large arguments).
    x_proj_t = x[:, None] * W[None, :] * 2.0 * np.pi
    ref_t = jnp.concatenate([jnp.sin(x_proj_t), jnp.cos(x_proj_t)], axis=-1)
    np.testing.assert_allclose(np.asarray(out), np.asarray(ref_t), rtol=1e-4, atol=5e-4)

    assert out.shape == (B, embed_dim)
    assert out.dtype == jnp.float32
    print("KERNEL_OK")
</pallas_src>

<mosaic_0001>
module attributes {stable_mosaic.version = 11 : i64} {
  func.func @_time_embedding_kernel(%arg0: i32, %arg1: memref<8x1xf32, #tpu.memory_space<vmem>>, %arg2: memref<1x128xf32, #tpu.memory_space<vmem>>, %arg3: memref<8x256xf32, #tpu.memory_space<vmem>>) attributes {dimension_semantics = [#tpu.dimension_semantics<parallel>], iteration_bounds = array<i64: 2>, scalar_prefetch = 0 : i64, scratch_operands = 0 : i64, tpu.core_type = #tpu.core_type<tc>, window_params = [{transform_indices = @transform_0, window_bounds = array<i64: 8, 1>}, {pipeline_mode = #tpu.pipeline_mode<synchronous>, transform_indices = @transform_1, window_bounds = array<i64: 1, 128>}, {transform_indices = @transform_2, window_bounds = array<i64: 8, 256>}]} {
    %c0 = arith.constant 0 : index
    %c0_0 = arith.constant 0 : index
    %0 = vector.load %arg2[%c0, %c0_0] : memref<1x128xf32, #tpu.memory_space<vmem>>, vector<1x128xf32>
    %c0_i32 = arith.constant 0 : i32
    %c8_i32 = arith.constant 8 : i32
    %1 = arith.muli %c0_i32, %c8_i32 : i32
    %2 = tpu.assume_multiple %1, 8 : i32
    %3 = arith.index_cast %2 : i32 to index
    %c0_1 = arith.constant 0 : index
    %4 = vector.load %arg1[%3, %c0_1] : memref<8x1xf32, #tpu.memory_space<vmem>>, vector<8x1xf32>
    %5 = vector.broadcast %4 : vector<8x1xf32> to vector<8x128xf32>
    %6 = vector.broadcast %0 : vector<1x128xf32> to vector<8x128xf32>
    %7 = arith.mulf %5, %6 : vector<8x128xf32>
    %cst = arith.constant 0.636619746 : f32
    %8 = vector.broadcast %cst : f32 to vector<8x128xf32>
    %9 = arith.mulf %7, %8 : vector<8x128xf32>
    %cst_2 = arith.constant 5.000000e-01 : f32
    %10 = vector.broadcast %cst_2 : f32 to vector<8x128xf32>
    %11 = arith.addf %9, %10 : vector<8x128xf32>
    %12 = math.floor %11 : vector<8x128xf32>
    %cst_3 = arith.constant 1.5703125 : f32
    %13 = vector.broadcast %cst_3 : f32 to vector<8x128xf32>
    %14 = arith.mulf %12, %13 : vector<8x128xf32>
    %15 = arith.subf %7, %14 : vector<8x128xf32>
    %cst_4 = arith.constant 4.83751297E-4 : f32
    %16 = vector.broadcast %cst_4 : f32 to vector<8x128xf32>
    %17 = arith.mulf %12, %16 : vector<8x128xf32>
    %18 = arith.subf %15, %17 : vector<8x128xf32>
    %cst_5 = arith.constant 7.549790e-08 : f32
    %19 = vector.broadcast %cst_5 : f32 to vector<8x128xf32>
    %20 = arith.mulf %12, %19 : vector<8x128xf32>
    %21 = arith.subf %18, %20 : vector<8x128xf32>
    %22 = arith.mulf %21, %21 : vector<8x128xf32>
    %23 = arith.mulf %21, %22 : vector<8x128xf32>
    %cst_6 = arith.constant -1.95152956E-4 : f32
    %24 = vector.broadcast %cst_6 : f32 to vector<8x128xf32>
    %25 = arith.mulf %22, %24 : vector<8x128xf32>
    %cst_7 = arith.constant 0.00833216123 : f32
    %26 = vector.broadcast %cst_7 : f32 to vector<8x128xf32>
    %27 = arith.addf %26, %25 : vector<8x128xf32>
    %28 = arith.mulf %22, %27 : vector<8x128xf32>
    %cst_8 = arith.constant -0.166666552 : f32
    %29 = vector.broadcast %cst_8 : f32 to vector<8x128xf32>
    %30 = arith.addf %29, %28 : vector<8x128xf32>
    %31 = arith.mulf %23, %30 : vector<8x128xf32>
    %32 = arith.addf %21, %31 : vector<8x128xf32>
    %cst_9 = arith.constant 2.44331568E-5 : f32
    %33 = vector.broadcast %cst_9 : f32 to vector<8x128xf32>
    %34 = arith.mulf %22, %33 : vector<8x128xf32>
    %cst_10 = arith.constant -0.00138873165 : f32
    %35 = vector.broadcast %cst_10 : f32 to vector<8x128xf32>
    %36 = arith.addf %35, %34 : vector<8x128xf32>
    %37 = arith.mulf %22, %36 : vector<8x128xf32>
    %cst_11 = arith.constant 0.0416666456 : f32
    %38 = vector.broadcast %cst_11 : f32 to vector<8x128xf32>
    %39 = arith.addf %38, %37 : vector<8x128xf32>
    %40 = arith.mulf %22, %39 : vector<8x128xf32>
    %cst_12 = arith.constant -5.000000e-01 : f32
    %41 = vector.broadcast %cst_12 : f32 to vector<8x128xf32>
    %42 = arith.addf %41, %40 : vector<8x128xf32>
    %43 = arith.mulf %22, %42 : vector<8x128xf32>
    %cst_13 = arith.constant 1.000000e+00 : f32
    %44 = vector.broadcast %cst_13 : f32 to vector<8x128xf32>
    %45 = arith.addf %44, %43 : vector<8x128xf32>
    %46 = arith.fptosi %12 : vector<8x128xf32> to vector<8x128xi32>
    %c3_i32 = arith.constant 3 : i32
    %47 = vector.broadcast %c3_i32 : i32 to vector<8x128xi32>
    %48 = arith.andi %46, %47 : vector<8x128xi32>
    %c0_i32_14 = arith.constant 0 : i32
    %49 = vector.broadcast %c0_i32_14 : i32 to vector<8x128xi32>
    %50 = arith.cmpi eq, %48, %49 : vector<8x128xi32>
    %c1_i32 = arith.constant 1 : i32
    %51 = vector.broadcast %c1_i32 : i32 to vector<8x128xi32>
    %52 = arith.cmpi eq, %48, %51 : vector<8x128xi32>
    %c2_i32 = arith.constant 2 : i32
    %53 = vector.broadcast %c2_i32 : i32 to vector<8x128xi32>
    %54 = arith.cmpi eq, %48, %53 : vector<8x128xi32>
    %cst_15 = arith.constant 0.000000e+00 : f32
    %55 = vector.broadcast %cst_15 : f32 to vector<8x128xf32>
    %56 = arith.subf %55, %32 : vector<8x128xf32>
    %cst_16 = arith.constant 0.000000e+00 : f32
    %57 = vector.broadcast %cst_16 : f32 to vector<8x128xf32>
    %58 = arith.subf %57, %45 : vector<8x128xf32>
    %59 = arith.select %54, %56, %58 : vector<8x128xi1>, vector<8x128xf32>
    %60 = arith.select %52, %45, %59 : vector<8x128xi1>, vector<8x128xf32>
    %61 = arith.select %50, %32, %60 : vector<8x128xi1>, vector<8x128xf32>
    %c0_i32_17 = arith.constant 0 : i32
    %62 = vector.broadcast %c0_i32_17 : i32 to vector<8x128xi32>
    %63 = arith.cmpi eq, %48, %62 : vector<8x128xi32>
    %c1_i32_18 = arith.constant 1 : i32
    %64 = vector.broadcast %c1_i32_18 : i32 to vector<8x128xi32>
    %65 = arith.cmpi eq, %48, %64 : vector<8x128xi32>
    %cst_19 = arith.constant 0.000000e+00 : f32
    %66 = vector.broadcast %cst_19 : f32 to vector<8x128xf32>
    %67 = arith.subf %66, %32 : vector<8x128xf32>
    %c2_i32_20 = arith.constant 2 : i32
    %68 = vector.broadcast %c2_i32_20 : i32 to vector<8x128xi32>
    %69 = arith.cmpi eq, %48, %68 : vector<8x128xi32>
    %cst_21 = arith.constant 0.000000e+00 : f32
    %70 = vector.broadcast %cst_21 : f32 to vector<8x128xf32>
    %71 = arith.subf %70, %45 : vector<8x128xf32>
    %72 = arith.select %69, %71, %32 : vector<8x128xi1>, vector<8x128xf32>
    %73 = arith.select %65, %67, %72 : vector<8x128xi1>, vector<8x128xf32>
    %74 = arith.select %63, %45, %73 : vector<8x128xi1>, vector<8x128xf32>
    %75 = arith.index_cast %2 : i32 to index
    %c0_22 = arith.constant 0 : index
    %76 = vector.load %arg3[%75, %c0_22] : memref<8x256xf32, #tpu.memory_space<vmem>>, vector<8x128xf32>
    tpu.vector_store %arg3[%75, %c0_22], %61 {strides = array<i32>} : memref<8x256xf32, #tpu.memory_space<vmem>>, vector<8x128xf32>,
    %77 = arith.index_cast %2 : i32 to index
    %c128 = arith.constant 128 : index
    %78 = vector.load %arg3[%77, %c128] : memref<8x256xf32, #tpu.memory_space<vmem>>, vector<8x128xf32>
    tpu.vector_store %arg3[%77, %c128], %74 {strides = array<i32>} : memref<8x256xf32, #tpu.memory_space<vmem>>, vector<8x128xf32>,
    %c1_i32_23 = arith.constant 1 : i32
    return
  }
  func.func @transform_0(%arg0: i32) -> (i32, i32) {
    %c0_i32 = arith.constant 0 : i32
    %c0_i32_0 = arith.constant 0 : i32
    return %arg0, %c0_i32 : i32, i32
  }
  func.func @transform_1(%arg0: i32) -> (i32, i32) {
    %c0_i32 = arith.constant 0 : i32
    %c0_i32_0 = arith.constant 0 : i32
    %c0_i32_1 = arith.constant 0 : i32
    return %c0_i32, %c0_i32_0 : i32, i32
  }
  func.func @transform_2(%arg0: i32) -> (i32, i32) {
    %c0_i32 = arith.constant 0 : i32
    %c0_i32_0 = arith.constant 0 : i32
    return %arg0, %c0_i32 : i32, i32
  }
}

</mosaic_0001>

<bundles_post_ra>
// kernel: tpu_custom_call.1
= control target key start
LH: loop header
LB: loop body
LE: loop exit
PB: predicated region body
PF: predicated region fallthrough
CT: control target
= control target key end

     0   :  { %7 = vsyncpa [#allocation3], 0  ;;  %s493_s0 = inlined_call_operand.vmem [shape: f32[16,1], index: 0, kind: input, shape index: {}]   ;;  %s494_s1 = inlined_call_operand.vmem [shape: f32[1,128], index: 1, kind: input, shape index: {}]   ;;  %s495_s2 = inlined_call_operand.hbm [shape: f32[16,256], index: 2, kind: output, shape index: {}]  }
   0x1   :  { %9 = vsyncpa [#allocation3 + $0x1], 0  ;;  %s405_s9 = smov 0   ;;  %s407_s10 = smov 0  }
   0x2   :  { %s409_s11 = smov 0   ;;  %s411_s12 = smov 0  }
   0x3 LB: > { %s426_s13 = sadd.s32 4294967295, %s387_s12   ;;  %s269_s14 = sadd.s32 4294967294, %s387_s12   ;;  %s387_s12 = sphi %s411_s12, %s501_s12   ;;  %s383_s11 = sphi %s409_s11, %s500_s11   ;;  %s379_s10 = sphi %s407_s10, %s499_s10   ;;  %s375_s9 = sphi %s405_s9, %s498_s9  }
   0x4   : > { %s430_s15 = sadd.s32 1, %s387_s12   ;;  %s69_s16 = sadd.s32 1, %s383_s11 }
   0x5   : > { %s66_s17 = ssub.s32 %s387_s12, %s430_s15  ;;  %p79_p0 = scmp.ne.s32.totalorder %s383_s11, %s379_s10 }
   0x6   : > { %p67_p1 = scmp.eq.s32.totalorder %s66_s17, 0  ;;  %p80_p2 = scmp.eq.s32.totalorder %s426_s13, 1 }
   0x7   : > { %p85_p3 = scmp.ne.s32.totalorder %s379_s10, %s375_s9  ;;  %p86_p4 = scmp.eq.s32.totalorder %s269_s14, 1 }
   0x8   : > { %s441_s18 = scalar_select %p67_p1, %s383_s11, %s69_s16  }
   0x9   : > { %p443_p5 = por %p80_p2, %p79_p0  ;;  %p447_p6 = por %p86_p4, %p85_p3 }
   0xa   : > { %p272_p7 = scmp.ge.s32.totalorder %s387_s12, 1  ;;  %p114_p8 = scmp.lt.s32.totalorder %s387_s12, 3 }
   0xc   : > { %p115_p9 = pnand %p272_p7, %p114_p8 }
   0xd   : > { %p135_p10 = scmp.lt.s32.totalorder (!%p115_p9), %s426_s13, 1  ;;  %s132_s28 = sand.u32 (!%p115_p9), 1, %s379_s10  }
   0xe   : > { %118 = sbr.rel (%p115_p9) target bundleno = 182 (0xb6), region = 28  ;;  %s273_s29 = sshll.u32 (!%p115_p9), %s132_s28, 4 }
   0xf   : > { %s280_s30 = sshll.u32 (!%p115_p9), %s426_s13, 4  ;;  %s134_s6 = scalar_lea.vmem (!%p115_p9), [#allocation2], %s273_s29 }
  0x10   : > { %s205_s5 = scalar_lea.hbm (!%p115_p9), %s495_s2, %s280_s30  ;;  %s207_s7 = sshll.u32 (!%p115_p9), %s134_s6, 4  ;;  %s208_s7 = int_to_ptr.vmem [resolvable:$true] %s207_s7 }
  0x11   : > { %s209_s8 = sshll.u32 (!%p115_p9), %s205_s5, 4  ;;  %s210_s8 = int_to_ptr.hbm [resolvable:$true] %s209_s8 }
  0x12   : > { %s339_s14 = sshra.s32 (!%p115_p9), %s210_s8, 4  ;;  %s340_s14 = int_to_ptr.hbm [resolvable:$true] %s339_s14 }
  0x13   : > { %v389_v0 = vmov 0   ;;  %s136_s21 = scalar_select %p135_p10, %s426_s13, 1  ;;  %v324_v2 = vld [vmem:[%s494_s1] ss:$0 sm:$0xff] }
  0x14   : > { %323 = vset.pattern.permute.xlu0 %v389_v0  ;;  %s194_s13 = scalar_lea.sflag [#allocation3], %s132_s28  ;;  %s341_s16 = scalar_lea.hbm %s340_s14, 16 }
  0x15   : > { %s274_s22 = sshll.u32 %s136_s21, 3  ;;  %p342_p11 = scmp.ne.s32.totalorder %s340_s14, %s341_s16 }
  0x16   : > { %s138_s25 = scalar_lea.vmem %s493_s0, %s274_s22  ;;  %s345_s22 = scalar_lea.hbm %s495_s2, 32 }
  0x17   : > { %v140_v1 = vld [vmem:[%s138_s25] sm:$0xff]  ;;  %p343_p12 = pnand %p342_p11, %p443_p5  ;;  %p346_p0 = scmp.lt.s32.totalorder %s340_s14, %s495_s2 }
  0x18   : > { %143 = vperm.xlu0 %323, %v140_v1   ;;  %p347_p1 = scmp.lt.s32.totalorder %s345_s22, %s341_s16 }
  0x19   : > { %p344_p13 = pneg %p343_p12 }
  0x1a   : > { %p348_p2 = por %p347_p1, %p346_p0 }
  0x1c   : > { %p349_p3 = pnand %p348_p2, %p344_p13 }
  0x8a   : > { %v144_v3 = vpop.permute.xlu0 %143 }
  0x8b   : > { %v149_v4 = vmul.f32 %v324_v2, %v144_v3 }
  0x8d   : > { %v150_v5 = vmul.f32 0.63661975, %v149_v4 }
  0x8f   : > { %v151_v6 = vadd.f32 0.5, %v150_v5 }
  0x91   : > { %v152_v7 = vfloor.f32 %v151_v6 }
  0x93   : > { %v153_v8 = vmul.f32 1.5703125, %v152_v7  ;;  %v155_v10 = vmul.f32 0.0004837513, %v152_v7  ;;  %v157_v12 = vmul.f32 7.54979e-08, %v152_v7  ;;  %v282_v26 = vcvt.f32.s32 %v152_v7 }
  0x95   : > { %v154_v9 = vsub.f32 %v149_v4, %v153_v8  ;;  %v176_v30 = vand.u32 3, %v282_v26 }
  0x97   : > { %v156_v11 = vsub.f32 %v154_v9, %v155_v10  ;;  %vm179_vm0 = vcmp.eq.s32.totalorder %v176_v30, 2  ;;  %vm178_vm1 = vcmp.eq.s32.totalorder %v176_v30, 1  ;;  %vm177_vm2 = vcmp.eq.s32.totalorder %v176_v30, 0 }
  0x99   : > { %v158_v13 = vsub.f32 %v156_v11, %v157_v12 }
  0x9b   : > { %v159_v14 = vmul.f32 %v158_v13, %v158_v13 }
  0x9d   : > { %v161_v15 = vmul.f32 -0.00019515296, %v159_v14  ;;  %v167_v16 = vmul.f32 2.4433157e-05, %v159_v14  ;;  %v160_v21 = vmul.f32 %v159_v14, %v158_v13 }
  0x9f   : > { %v162_v17 = vadd.f32 0.008332161, %v161_v15  ;;  %v168_v18 = vadd.f32 -0.0013887316, %v167_v16 }
  0xa1   : > { %v163_v19 = vmul.f32 %v162_v17, %v159_v14  ;;  %v169_v20 = vmul.f32 %v168_v18, %v159_v14 }
  0xa3   : > { %v164_v22 = vadd.f32 -0.16666655, %v163_v19  ;;  %v170_v23 = vadd.f32 0.041666646, %v169_v20 }
  0xa5   : > { %v165_v24 = vmul.f32 %v164_v22, %v160_v21  ;;  %v171_v25 = vmul.f32 %v170_v23, %v159_v14 }
  0xa7   : > { %v172_v27 = vadd.f32 -0.5, %v171_v25  ;;  %v166_v28 = vadd.f32 %v165_v24, %v158_v13 }
  0xa9   : > { %v173_v29 = vmul.f32 %v172_v27, %v159_v14  ;;  %v180_v32 = vsub.f32 0.0, %v166_v28 }
  0xab   : > { %v174_v31 = vadd.f32 1.0, %v173_v29 }
  0xad   : > { %v181_v33 = vsub.f32 0.0, %v174_v31 }
  0xaf   : > { %v182_v34 = vsel %vm179_vm0, %v180_v32, %v181_v33  ;;  %v185_v35 = vsel %vm179_vm0, %v181_v33, %v166_v28 }
  0xb0   : > { %v183_v36 = vsel %vm178_vm1, %v174_v31, %v182_v34  ;;  %v186_v37 = vsel %vm178_vm1, %v180_v32, %v185_v35 }
  0xb1   : > { %v184_v38 = vsel %vm177_vm2, %v166_v28, %v183_v36  ;;  %v187_v39 = vsel %vm177_vm2, %v174_v31, %v186_v37 }
  0xb2   : > { %191 = vst [vmem:[%s134_s6] sm:$0xff] %v184_v38 }
  0xb3   : > { %192 = vst [vmem:[%s134_s6 + $0x8] sm:$0xff] %v187_v39 }
  0xb4   : > { %352 = shalt.err (!%p349_p3)
}
  0xb5   : > { %283 = dma.vmem_to_hbm [thread:$0]  (%p443_p5), %s208_s7, 256, %s210_s8, %s194_s13  }
  0xb6 PF: > { %p289_p4 = scmp.ge.s32.totalorder %s387_s12, 2  ;;  %s221_s25 = sand.u32 1, %s375_s9  }
  0xb7   : > { %s222_s26 = scalar_lea.sflag [#allocation3], %s221_s25 }
  0xb8   : > { %p286_p7 = pnand %p289_p4, %p447_p6 }
  0xba   : > { %p287_p8 = pneg %p286_p7 }
  0xbc   : > { %370 = dma.done.wait (%p287_p8), %s222_s26, 256  }
  0xbd   : > { %372 = vsyncadd (%p287_p8), %s222_s26, 4294967040  ;;  %p12_p9 = scmp.ge.s32.totalorder %s430_s15, 4   ;;  %s498_s9 = smov %s379_s10 }
  0xbe   : > { %s499_s10 = smov %s383_s11  ;;  %s500_s11 = smov %s441_s18 }
  0xbf   : > { %s501_s12 = smov %s430_s15  ;;  %14 = sbr.rel (!%p12_p9) target bundleno = 3 (0x3), region = 64 }
  0xc4   :  { %228 = vsyncpa [#allocation3], 1 }
  0xc5   :  { %230 = vsyncpa [#allocation3 + $0x1], 1 }

</bundles_post_ra>
